<compile_context>
chip_gen: v7x
topology: tpu7x:2x2x1
jax: 0.10.0
libtpu: 0.0.40
codegen_flags: <defaults>
</compile_context>

<pallas_src>
import functools
import itertools

import numpy as np
import jax
import jax.numpy as jnp
from jax.experimental import pallas as pl
from jax.experimental.pallas import tpu as pltpu

_HIGHEST = jax.lax.Precision.HIGHEST


# ----------------------------- __init__ glue (plain JAX) -----------------------------

def compute_partial_repr(input_points, control_points):
    """input_points (N,2), control_points (M,2) -> (N, M) TPS radial basis."""
    diff = input_points[:, None, :] - control_points[None, :, :]
    dist = jnp.sum(diff * diff, axis=-1)
    # 0.5 * d * log(d); d == 0 -> NaN in torch, then masked to 0. Replicate with where.
    safe = jnp.where(dist == 0.0, 1.0, dist)
    repr_mat = 0.5 * dist * jnp.log(safe)
    return jnp.where(dist == 0.0, 0.0, repr_mat)


def build_tps_buffers(target_img_size, target_control_points):
    """Builds inverse_kernel (N+3, N+3) and target_coordinate_repr (HW, N+3)."""
    cp = target_control_points.astype(jnp.float32)
    N = cp.shape[0]
    H, W = target_img_size

    partial = compute_partial_repr(cp, cp)                       # (N, N)
    fk = jnp.zeros((N + 3, N + 3), jnp.float32)
    fk = fk.at[:N, :N].set(partial)
    fk = fk.at[:N, N].set(1.0)          # column -3
    fk = fk.at[N, :N].set(1.0)          # row -3
    fk = fk.at[:N, N + 1:].set(cp)      # last two columns
    fk = fk.at[N + 1:, :N].set(cp.T)    # last two rows
    inverse_kernel = jnp.linalg.inv(fk)                          # (N+3, N+3)

    HW = H * W
    tc = jnp.asarray(list(itertools.product(range(H), range(W))), jnp.float32)
    Y = tc[:, 0:1] * 2.0 / (H - 1) - 1.0
    X = tc[:, 1:2] * 2.0 / (W - 1) - 1.0
    coords = jnp.concatenate([X, Y], axis=1)                     # (HW, 2)
    coord_partial = compute_partial_repr(coords, cp)             # (HW, N)
    target_coordinate_repr = jnp.concatenate(
        [coord_partial, jnp.ones((HW, 1), jnp.float32), coords], axis=1)  # (HW, N+3)

    return inverse_kernel, target_coordinate_repr


def _round_up(x, m):
    return (x + m - 1) // m * m


def fuse_tps_buffers(inverse_kernel, target_coordinate_repr):
    """Pre-fuse the constant operands into A2 (K_pad, L) such that

        src.reshape(B, 2N) @ A2   produces the interleaved (x0, y0, x1, y1, ...) grid,

    i.e. A2[2j+c, 2h+c'] = A[h, j] * (c == c') with A = TCR @ inv[:, :N].  (The zero
    padding rows of Y contribute nothing, so dropping the last 3 columns of the inverse
    kernel is exact.)  The K dim (2N) is zero-padded to a multiple of 8 (f32 sublanes),
    the lane dim (2*HW) to a multiple of 256 so it always splits into an even number of
    128-aligned tiles.  Returns (A2_padded, HW).
    """
    N = inverse_kernel.shape[0] - 3
    HW = target_coordinate_repr.shape[0]
    A = jnp.matmul(target_coordinate_repr, inverse_kernel[:, :N],
                   precision=_HIGHEST)                           # (HW, N)
    eye2 = jnp.eye(2, dtype=jnp.float32)
    # [j, c, h, c'] = A[h, j] * (c == c')  ->  reshape to (2N, 2HW)
    A2 = (A.T[:, None, :, None] * eye2[None, :, None, :]).reshape(2 * N, 2 * HW)

    k_pad = _round_up(2 * N, 8)
    l_pad = _round_up(2 * HW, 256)
    if (k_pad, l_pad) != (2 * N, 2 * HW):
        A2 = jnp.pad(A2, ((0, k_pad - 2 * N), (0, l_pad - 2 * HW)))
    return A2, HW


# ----------------------------- Pallas kernel (forward hot path) -----------------------------

def tps_kernel(src_ref, a2_ref, out_ref, *, precision):
    # src_ref: (B, K)   (x,y)-interleaved source control points (grid-invariant block)
    # a2_ref : (K, T)   lane tile of the fused, interleave-expanded constant
    # out_ref: (B, T)   lane-dense interleaved output tile (x0, y0, x1, y1, ...)
    out_ref[...] = jnp.dot(
        src_ref[...], a2_ref[...],
        preferred_element_type=jnp.float32,
        precision=precision,
    )


def _pick_lane_tile(lane_extent, bytes_per_lane, max_lane_tile, vmem_budget_bytes):
    """Largest 128-multiple tile t with: t | lane_extent, lane_extent // t even (>= 2
    tiles -> both TCs on v7x), t <= max_lane_tile, and the double-buffered working set
    (bytes_per_lane * t) within the VMEM budget."""
    half = lane_extent // 2                     # lane_extent is a multiple of 256
    cap = min(max_lane_tile, vmem_budget_bytes // max(bytes_per_lane, 1))
    cap = max(128, (cap // 128) * 128)
    t = max(128, (min(cap, half) // 128) * 128)
    while t > 128 and half % t != 0:
        t -= 128
    return t                                    # 128 always divides half


def tps_grid_gen(source_control_points, fused_repr, hw, *,
                 max_lane_tile=8192, vmem_budget_bytes=24 * 1024 * 1024,
                 precision=_HIGHEST):
    """Pallas implementation of TPSGridGen.forward.

    source_control_points: (B, N, 2) float32
    fused_repr            : (K_pad, L) float32 from fuse_tps_buffers
    hw                    : H * W
    returns               : (B, HW, 2) float32 (same layout as the PyTorch module)
    """
    B, N, two = source_control_points.shape
    assert two == 2
    k_pad, lane_extent = fused_repr.shape
    assert k_pad >= 2 * N and lane_extent >= 2 * hw

    # (B, N, 2) -> (B, 2N): free row-major reshape (no transpose), column 2j+c == [j, c].
    src = source_control_points.astype(jnp.float32).reshape(B, 2 * N)
    if k_pad != 2 * N:
        # Extra columns hit zero rows of A2, so padding values are irrelevant.
        src = jnp.pad(src, ((0, 0), (0, k_pad - 2 * N)))

    # Double-buffered A2 tile + output tile, f32.  (src block is tiny and grid-invariant.)
    bytes_per_lane = 4 * 2 * (k_pad + B)
    tile = _pick_lane_tile(lane_extent, bytes_per_lane, max_lane_tile, vmem_budget_bytes)
    num_tiles = lane_extent // tile             # even, >= 2

    cost = pl.CostEstimate(
        flops=2 * B * k_pad * lane_extent,
        transcendentals=0,
        bytes_accessed=4 * (k_pad * lane_extent + B * k_pad + B * lane_extent),
    )

    # NOTE: we intentionally do NOT pad B up to a sublane multiple: that would force a
    # padded HBM output plus a post-kernel slice pass, which costs more than the
    # sublane-masked stores it would remove (the kernel is HBM/DMA-bound).
    out = pl.pallas_call(
        functools.partial(tps_kernel, precision=precision),
        out_shape=jax.ShapeDtypeStruct((B, lane_extent), jnp.float32),
        grid_spec=pltpu.PrefetchScalarGridSpec(
            num_scalar_prefetch=0,
            grid=(num_tiles,),
            in_specs=[
                # Grid-invariant tiny operand: constant block index -> DMA'd once,
                # kept resident across all lane tiles.
                pl.BlockSpec((B, k_pad), lambda t: (0, 0)),
                # Lane-dense constant tile.
                pl.BlockSpec((k_pad, tile), lambda t: (0, t)),
            ],
            out_specs=pl.BlockSpec((B, tile), lambda t: (0, t)),
        ),
        compiler_params=pltpu.CompilerParams(
            dimension_semantics=("parallel",),   # lane tiles shard across TCs on v7x
            vmem_limit_bytes=32 * 1024 * 1024,   # safe within v7x's 64 MiB/TC VMEM
        ),
        cost_estimate=cost,
    )(src, fused_repr)

    if lane_extent != 2 * hw:
        out = out[:, : 2 * hw]                  # only when 2*HW wasn't a 256 multiple
    # (B, 2*HW) row-major has identical bytes to (B, HW, 2) row-major: reshape is free.
    return out.reshape(B, hw, 2)


class TPSGridGen:
    """JAX/Pallas port of aster/model/TPS.py:TPSGridGen (forward pass)."""

    def __init__(self, target_img_size, target_control_points, *,
                 max_lane_tile=8192, vmem_budget_bytes=24 * 1024 * 1024,
                 precision=_HIGHEST):
        target_control_points = jnp.asarray(target_control_points, jnp.float32)
        assert target_control_points.ndim == 2 and target_control_points.shape[1] == 2
        self.num_points = int(target_control_points.shape[0])
        self.inverse_kernel, self.target_coordinate_repr = build_tps_buffers(
            target_img_size, target_control_points)
        self.fused_repr, self.hw = fuse_tps_buffers(
            self.inverse_kernel, self.target_coordinate_repr)
        self._kwargs = dict(max_lane_tile=max_lane_tile,
                            vmem_budget_bytes=vmem_budget_bytes,
                            precision=precision)

    def __call__(self, source_control_points):
        assert source_control_points.ndim == 3
        assert source_control_points.shape[1] == self.num_points
        assert source_control_points.shape[2] == 2
        return tps_grid_gen(source_control_points, self.fused_repr, self.hw,
                            **self._kwargs)


# ----------------------------- demo / correctness check -----------------------------

if __name__ == "__main__":
    # Small, deterministic configuration: 16x16 output grid, 8 control points
    # (4 along the top edge, 4 along the bottom edge).
    H, W = 16, 16
    K = 4
    xs = np.linspace(-1.0, 1.0, K)
    top = np.stack([xs, -np.ones(K)], axis=1)
    bot = np.stack([xs, np.ones(K)], axis=1)
    target_cps = jnp.asarray(np.concatenate([top, bot], axis=0), jnp.float32)  # (8, 2)

    tps = TPSGridGen((H, W), target_cps)

    B, N = 2, target_cps.shape[0]
    key = jax.random.PRNGKey(0)
    source_control_points = (
        target_cps[None, :, :]
        + 0.1 * jax.random.normal(key, (B, N, 2), dtype=jnp.float32)
    )

    out = tps(source_control_points)
    out = jax.block_until_ready(out)
    assert out.shape == (B, H * W, 2)

    # Pure-JAX reference of the exact PyTorch forward (with the zero padding_matrix),
    # computed at high precision.
    Ypad = jnp.concatenate(
        [source_control_points, jnp.zeros((B, 3, 2), jnp.float32)], axis=1)
    mapping = jnp.einsum("ij,bjk->bik", tps.inverse_kernel, Ypad, precision=_HIGHEST)
    ref = jnp.einsum("hj,bjk->bhk", tps.target_coordinate_repr, mapping,
                     precision=_HIGHEST)
    np.testing.assert_allclose(np.asarray(out), np.asarray(ref), rtol=1e-4, atol=1e-4)

    print("KERNEL_OK")
</pallas_src>

<mosaic_0001>
module attributes {stable_mosaic.version = 11 : i64} {
  func.func @tps_kernel(%arg0: i32, %arg1: memref<2x16xf32, #tpu.memory_space<vmem>>, %arg2: memref<16x256xf32, #tpu.memory_space<vmem>>, %arg3: memref<2x256xf32, #tpu.memory_space<vmem>>) attributes {dimension_semantics = [#tpu.dimension_semantics<parallel>], iteration_bounds = array<i64: 2>, scalar_prefetch = 0 : i64, scratch_operands = 0 : i64, tpu.core_type = #tpu.core_type<tc>, window_params = [{pipeline_mode = #tpu.pipeline_mode<synchronous>, transform_indices = @transform_0, window_bounds = array<i64: 2, 16>}, {transform_indices = @transform_1, window_bounds = array<i64: 16, 256>}, {transform_indices = @transform_2, window_bounds = array<i64: 2, 256>}]} {
    %c0 = arith.constant 0 : index
    %c0_0 = arith.constant 0 : index
    %0 = vector.load %arg1[%c0, %c0_0] : memref<2x16xf32, #tpu.memory_space<vmem>>, vector<2x16xf32>
    %c0_1 = arith.constant 0 : index
    %c0_2 = arith.constant 0 : index
    %1 = vector.load %arg2[%c0_1, %c0_2] : memref<16x256xf32, #tpu.memory_space<vmem>>, vector<16x256xf32>
    %cst = arith.constant dense<0.000000e+00> : vector<2x256xf32>
    %2 = tpu.matmul %0, %1, %cst {dimension_numbers = #tpu.dot_dimension_numbers<[1], [0], [0], [1], [0, 0, 1, 1], [], []>, precision = #tpu.contract_precision<fp32>} : vector<2x16xf32>, vector<16x256xf32>, vector<2x256xf32> -> vector<2x256xf32>
    %c0_3 = arith.constant 0 : index
    %c0_4 = arith.constant 0 : index
    %3 = vector.load %arg3[%c0_3, %c0_4] : memref<2x256xf32, #tpu.memory_space<vmem>>, vector<2x256xf32>
    tpu.vector_store %arg3[%c0_3, %c0_4], %2 {strides = array<i32>} : memref<2x256xf32, #tpu.memory_space<vmem>>, vector<2x256xf32>,
    return
  }
  func.func @transform_0(%arg0: i32) -> (i32, i32) {
    %c0_i32 = arith.constant 0 : i32
    %c0_i32_0 = arith.constant 0 : i32
    %c0_i32_1 = arith.constant 0 : i32
    return %c0_i32, %c0_i32_0 : i32, i32
  }
  func.func @transform_1(%arg0: i32) -> (i32, i32) {
    %c0_i32 = arith.constant 0 : i32
    %c0_i32_0 = arith.constant 0 : i32
    return %c0_i32, %arg0 : i32, i32
  }
  func.func @transform_2(%arg0: i32) -> (i32, i32) {
    %c0_i32 = arith.constant 0 : i32
    %c0_i32_0 = arith.constant 0 : i32
    return %c0_i32, %arg0 : i32, i32
  }
}

</mosaic_0001>

<bundles_post_ra>
// kernel: tpu_custom_call.1
= control target key start
LH: loop header
LB: loop body
LE: loop exit
PB: predicated region body
PF: predicated region fallthrough
CT: control target
= control target key end

     0   :  { %7 = vsyncpa [#allocation3], 0  ;;  %s1249_s0 = inlined_call_operand.hbm [shape: f32[2,16], index: 0, kind: input, shape index: {}]   ;;  %s1250_s1 = inlined_call_operand.hbm [shape: f32[16,512], index: 1, kind: input, shape index: {}]   ;;  %s1251_s2 = inlined_call_operand.hbm [shape: f32[2,512], index: 2, kind: output, shape index: {}]  }
   0x1   :  { %8 = vsyncpa [#allocation6], 0 }
   0x2   :  { %10 = vsyncpa [#allocation6 + $0x1], 0 }
   0x3   :  { %11 = vsyncpa [#allocation4], 0 }
   0x4   :  { %13 = vsyncpa [#allocation4 + $0x1], 0  ;;  %s1052_s9 = smov 0   ;;  %s1054_s10 = smov 0  }
   0x5   :  { %s1056_s11 = smov 0   ;;  %s1058_s12 = smov 0  }
   0x6 LB: > { %s1073_s13 = sadd.s32 4294967295, %s1028_s12   ;;  %s786_s14 = sadd.s32 4294967294, %s1028_s12   ;;  %s1028_s12 = sphi %s1058_s12, %s1276_s12   ;;  %s1024_s11 = sphi %s1056_s11, %s1275_s11   ;;  %s1020_s10 = sphi %s1054_s10, %s1274_s10   ;;  %s1016_s9 = sphi %s1052_s9, %s1273_s9  }
   0x7   : > { %s1077_s15 = sadd.s32 1, %s1028_s12   ;;  %s47_s16 = sadd.s32 1, %s1024_s11 }
   0x8   : > { %s44_s17 = ssub.s32 %s1028_s12, %s1077_s15  ;;  %p54_p0 = scmp.ne.s32.totalorder %s1024_s11, %s1020_s10 }
   0x9   : > { %p45_p1 = scmp.eq.s32.totalorder %s44_s17, 0  ;;  %p55_p2 = scmp.eq.s32.totalorder %s1028_s12, 0 }
   0xa   : > { %p60_p3 = scmp.ne.s32.totalorder %s1020_s10, %s1016_s9  ;;  %p1252_p4 = scmp.eq.s32.totalorder %s1073_s13, 0 }
   0xb   : > { %s1089_s18 = scalar_select %p45_p1, %s1024_s11, %s47_s16  }
   0xc   : > { %p1091_p5 = por %p55_p2, %p54_p0  ;;  %p1097_p6 = por %p1252_p4, %p60_p3 }
   0xd   : > { %p84_p7 = scmp.eq.s32.totalorder %s1073_s13, 1  ;;  %p90_p8 = scmp.eq.s32.totalorder %s786_s14, 1 }
   0xe   : > { %s1258_s20 = scalar_select %p1097_p6, 1, 0 }
   0xf   : > { %p787_p9 = scmp.ge.s32.totalorder %s1028_s12, 1  ;;  %p97_p10 = scmp.lt.s32.totalorder %s1028_s12, 3 }
  0x10   : > { %p1104_p11 = por %p84_p7, %p54_p0  ;;  %p1108_p12 = por %p90_p8, %p60_p3 }
  0x11   : > { %p1112_p13 = pnand %p787_p9, %p97_p10  ;;  %s1030_s24 = smov [#allocation2]  }
  0x12   : > { %s1259_s21 = scalar_select %p1104_p11, 1, 0 }
  0x13   : > { %s1260_s22 = scalar_select %p1108_p12, 1, 0 }
  0x14   : > { %s1261_s23 = scalar_select %p1112_p13, 1, 0 }
  0x15   : > { %p847_p2 = pneg %p1112_p13  ;;  %s110_s25 = sshll.u32 %s1030_s24, 4  ;;  %s111_s25 = int_to_ptr.vmem [resolvable:$true] %s110_s25 }
  0x16   : > { %p860_p4 = scmp.lt.s32.totalorder %s1028_s12, 2  ;;  %p1262_p0 = scmp.eq.s32.totalorder %s1073_s13, 0 }
  0x17   : > { %s121_s27 = sand.u32 1, %s1024_s11   ;;  %s900_s4 = scalar_lea.hbm %s1249_s0, 32 }
  0x18   : > { %p1122_p7 = pnand %p847_p2, %p1262_p0  ;;  %p1129_p3 = pnand %p860_p4, %p1091_p5 }
  0x19   : > { %s790_s29 = sshll.u32 %s121_s27, 5  ;;  %p901_p8 = scmp.ne.s32.totalorder %s1249_s0, %s900_s4 }
  0x1a   : > { %s1264_s28 = scalar_select %p1129_p3, 1, 0 }
  0x1b   : > { %p902_p9 = pneg %p1122_p7  ;;  %p907_p4 = scmp.lt.u32.totalorder %s900_s4, %s1249_s0 }
  0x1d   : > { %p903_p10 = pnand %p902_p9, %p901_p8 }
  0x1f   : > { %p904_p2 = pneg %p903_p10 }
  0x21   : > { %p909_p5 = pnand %p907_p4, %p904_p2 }
  0x23   : > { %912 = shalt.err (!%p909_p5)
}
  0x24   : > { %s913_s14 = scalar_lea.vmem %s111_s25, 32  ;;  %p921_p11 = scmp.lt.s32.totalorder %s111_s25, %s111_s25 }
  0x25   : > { %p914_p0 = scmp.ne.s32.totalorder %s111_s25, %s913_s14  ;;  %p922_p6 = scmp.lt.s32.totalorder %s913_s14, %s913_s14 }
  0x27   : > { %p916_p1 = pnand %p914_p0, %p902_p9  ;;  %p923_p13 = por %p922_p6, %p921_p11 }
  0x29   : > { %p917_p12 = pneg %p916_p1 }
  0x2b   : > { %p924_p3 = pnand %p923_p13, %p917_p12 }
  0x2d   : > { %927 = shalt.err (!%p924_p3)
}
  0x2e   : > { %850 = dma.hbm_to_vmem [thread:$0]  (!%p1122_p7), %s1249_s0, 32, %s111_s25, [#allocation3]  }
  0x2f   : > { %s803_s19 = sshll.u32 %s1028_s12, 8  ;;  %s125_s24 = scalar_lea.vmem [#allocation5], %s790_s29 }
  0x30   : > { %s132_s30 = sshll.u32 %s125_s24, 4  ;;  %s1153_s5 = scalar_lea.hbm %s1250_s1, %s803_s19  ;;  %s1155_s30 = int_to_ptr.vmem [resolvable:$true] %s132_s30 }
  0x31   : > { %s1157_s26 = scalar_lea.sflag [#allocation6], %s121_s27  ;;  %s928_s6 = scalar_lea.hbm %s1153_s5, 512 }
  0x32   : > { %p929_p6 = scmp.ne.s32.totalorder %s1153_s5, %s928_s6  ;;  %p1265_p11 = scmp.ne.s32.totalorder %s1264_s28, 0 }
  0x33   : > { %s933_s7 = scalar_lea.hbm %s1250_s1, 1024  ;;  %p934_p7 = scmp.lt.u32.totalorder %s1153_s5, %s1250_s1 }
  0x34   : > { %p930_p12 = pneg %p1265_p11  ;;  %p935_p3 = scmp.lt.u32.totalorder %s933_s7, %s928_s6 }
  0x35   : > { %p937_p9 = scmp.lt.u32.totalorder %s928_s6, %s1153_s5 }
  0x36   : > { %p931_p13 = pnand %p930_p12, %p929_p6  ;;  %p936_p8 = por %p935_p3, %p934_p7 }
  0x38   : > { %p932_p1 = pneg %p931_p13  ;;  %p938_p10 = por %p937_p9, %p936_p8 }
  0x3a   : > { %p939_p2 = pnand %p938_p10, %p932_p1 }
  0x3c   : > { %942 = shalt.err (!%p939_p2)
}
  0x3d   : > { %s943_s27 = scalar_lea.vmem %s1155_s30, 512  ;;  %s1031_s16 = smov [#allocation5]  }
  0x3e   : > { %p944_p4 = scmp.ne.s32.totalorder %s1155_s30, %s943_s27  ;;  %s948_s17 = sshll.u32 %s1031_s16, 4  ;;  %s949_s17 = int_to_ptr.vmem [resolvable:$false] %s948_s17 }
  0x3f   : > { %s950_s19 = scalar_lea.vmem %s949_s17, 1024  ;;  %p951_p6 = scmp.lt.s32.totalorder %s1155_s30, %s949_s17 }
  0x40   : > { %p946_p5 = pnand %p944_p4, %p930_p12  ;;  %p952_p13 = scmp.lt.s32.totalorder %s950_s19, %s943_s27 }
  0x42   : > { %p947_p0 = pneg %p946_p5  ;;  %p953_p7 = por %p952_p13, %p951_p6 }
  0x44   : > { %p954_p3 = pnand %p953_p7, %p947_p0 }
  0x46   : > { %957 = shalt.err (!%p954_p3)
}
  0x47   : > { %s1032_s24 = smov 512   ;;  %s1033_s3 = smov 256  }
  0x48   : > { %s1034_s4 = smov 16   ;;  %p1266_p12 = scmp.ne.s32.totalorder %s1261_s23, 0 }
  0x49   : > { %854 = dma.hbm_to_vmem [thread:$0]  (!%p1265_p11), %s1153_s5, 512, %s1155_s30, %s1157_s26, %s1032_s24, %s1033_s3, %s1034_s4  }
  0x4a   : > { %144 = sbr.rel (%p1266_p12) target bundleno = 346 (0x15a), region = 28  ;;  %p1267_p1 = scmp.eq.s32.totalorder (!%p1266_p12), %s1073_s13, 0 }
  0x51   : > { %1003 = dma.done.wait (%p1267_p1), [#allocation3], 32   ;;  %p1268_p8 = pmov %p1267_p1 }
  0x52   : > { %s1192_s6 = sand.u32 1, %s1020_s10   ;;  %p1269_p9 = scmp.ne.s32.totalorder %s1258_s20, 0 }
  0x53   : > { %1005 = vsyncadd (%p1268_p8), [#allocation3], 4294967264  ;;  %s795_s25 = sshll.u32 %s1192_s6, 5  ;;  %s151_s29 = scalar_lea.sflag [#allocation6], %s1192_s6 }
  0x54   : > { %s154_s7 = scalar_lea.vmem [#allocation5], %s795_s25 }
  0x55   : > { %1007 = dma.done.wait (%p1269_p9), %s151_s29, 512  }
  0x56   : > { %1009 = vsyncadd (%p1269_p9), %s151_s29, 4294966784  ;;  %v1035_v0 = vmov 0.0   ;;  %vm182_vm0 = vcmask 130048   ;;  %v179_v1 = vld [vmem:[%s154_s7 + $0x8] sm:$0xff]  ;;  %v181_v2 = vld [vmem:[%s154_s7 + $0x18] sm:$0xff]  ;;  %s796_s20 = sshll.u32 %s1192_s6, 2 }
  0x57   : > { %507 = vmatprep.mubr.f32.mxu0 %v1035_v0  ;;  %254 = vmatprep.mubr.f32.mxu1 %v1035_v0  ;;  %v178_v3 = vld [vmem:[%s154_s7] sm:$0xff]  ;;  %v186_v4 = vand.u32 4294901760, %v179_v1  ;;  %v190_v5 = vand.u32 4294901760, %v181_v2  ;;  %v180_v6 = vld [vmem:[%s154_s7 + $0x10] sm:$0xff]  ;;  %v177_v8 = vld [vmem:[#allocation2] sm:$0x3] }
  0x58   : > { %v188_v7 = vand.u32 4294901760, %v178_v3  ;;  %v192_v9 = vand.u32 4294901760, %v180_v6  ;;  %v184_v10 = vsel %vm182_vm0, %v177_v8, 0  ;;  %s804_s23 = sshll.u32 %s1073_s13, 6  ;;  %s174_s28 = scalar_lea.vmem [#allocation7], %s796_s20 }
  0x59   : > { %v805_v11 = vpack.c.bf16 %v190_v5, %v186_v4  ;;  %v267_v12 = vsub.f32 %v179_v1, %v186_v4  ;;  %v279_v13 = vsub.f32 %v181_v2, %v190_v5  ;;  %v255_v17 = vand.u32 4294901760, %v184_v10  ;;  %s704_s30 = sshll.u32 %s174_s28, 4  ;;  %s1205_s8 = scalar_lea.hbm %s1251_s2, %s804_s23  ;;  %s1207_s30 = int_to_ptr.vmem [resolvable:$true] %s704_s30 }
  0x5a   : > { %v273_v14 = vsub.f32 %v178_v3, %v188_v7  ;;  %v807_v15 = vpack.c.bf16 %v192_v9, %v188_v7  ;;  %v285_v16 = vsub.f32 %v180_v6, %v192_v9  ;;  %s690_s14 = scalar_lea.sflag [#allocation4], %s1192_s6  ;;  %s958_s27 = scalar_lea.vmem %s1207_s30, 64 }
  0x5b   : > { %818 = vmatprep.subr.bf16.mxu0 %v805_v11  ;;  %806 = vmatprep.subr.bf16.mxu1 %v805_v11  ;;  %v268_v18 = vand.u32 4294901760, %v267_v12  ;;  %v280_v19 = vand.u32 4294901760, %v279_v13  ;;  %v256_v21 = vsub.f32 %v184_v10, %v255_v17  ;;  %v813_v38 = vpack.c.bf16 %v279_v13, %v267_v12  ;;  %p959_p11 = scmp.ne.s32.totalorder %s1207_s30, %s958_s27  ;;  %p1270_p10 = scmp.ne.s32.totalorder %s1259_s21, 0 }
  0x5c   : > { %v274_v20 = vand.u32 4294901760, %v273_v14  ;;  %820 = vmatpush1.bf16.msra.mxu0 %v807_v15  ;;  %808 = vmatpush1.bf16.msra.mxu1 %v807_v15  ;;  %v286_v22 = vand.u32 4294901760, %v285_v16  ;;  %v815_v39 = vpack.c.bf16 %v285_v16, %v273_v14  ;;  %s1036_s13 = smov [#allocation7]  }
  0x5d   : > { %v269_v23 = vsub.f32 %v267_v12, %v268_v18  ;;  %v281_v24 = vsub.f32 %v279_v13, %v280_v19  ;;  %v821_v25 = vpack.c.bf16 %v280_v19, %v268_v18  ;;  %v257_v27 = vand.u32 4294901760, %v256_v21  ;;  %p960_p2 = pnand %p959_p11, %p1270_p10  ;;  %s962_s16 = sshll.u32 %s1036_s13, 4  ;;  %s963_s16 = int_to_ptr.vmem [resolvable:$false] %s962_s16 }
  0x5e   : > { %v275_v26 = vsub.f32 %v273_v14, %v274_v20  ;;  %v287_v28 = vsub.f32 %v285_v16, %v286_v22  ;;  %v823_v29 = vpack.c.bf16 %v286_v22, %v274_v20  ;;  %s964_s17 = scalar_lea.vmem %s963_s16, 128  ;;  %p965_p5 = scmp.lt.s32.totalorder %s1207_s30, %s963_s16 }
  0x5f   : > { %v270_v30 = vand.u32 4294901760, %v269_v23  ;;  %v282_v31 = vand.u32 4294901760, %v281_v24  ;;  %822 = vmatprep.subr.bf16.mxu0 %v821_v25  ;;  %511 = vmatmul.mubr.f32.vlgmr.msra.gmra.mrb[0].mxu0 %v257_v27  ;;  %v258_v33 = vsub.f32 %v256_v21, %v257_v27  ;;  %p961_p4 = pneg %p960_p2  ;;  %p966_p0 = scmp.lt.s32.totalorder %s964_s17, %s958_s27 }
  0x60   : > { %v276_v32 = vand.u32 4294901760, %v275_v26  ;;  %v288_v34 = vand.u32 4294901760, %v287_v28  ;;  %824 = vmatpush1.bf16.msra.mxu0 %v823_v29  ;;  %593 = vmatprep.mubr.f32.mxu0 %v1035_v0 }
  0x61   : > { %v809_v35 = vpack.c.bf16 %v282_v31, %v270_v30  ;;  %v259_v36 = vand.u32 4294901760, %v258_v33  ;;  %826 = vmatprep.subr.bf16.mxu0 %v805_v11  ;;  %p967_p6 = por %p966_p0, %p965_p5 }
  0x62   : > { %v811_v37 = vpack.c.bf16 %v288_v34, %v276_v32 }
  0x63   : > { %810 = vmatprep.subr.bf16.mxu1 %v809_v35  ;;  %260 = vmatmul.mubr.f32.vlgmr.msra.gmra.mrb[0].mxu1 %v259_v36  ;;  %p968_p13 = pnand %p967_p6, %p961_p4 }
  0x64   : > { %812 = vmatpush1.bf16.msra.mxu1 %v811_v37  ;;  %350 = vmatprep.mubr.f32.mxu1 %v1035_v0 }
  0x65   : > { %814 = vmatprep.subr.bf16.mxu1 %v813_v38 }
  0x67   : > { %595 = vmatmul.mubr.f32.vlgmr.msra.gmra.mrb[0].mxu0 %v255_v17 }
  0x68   : > { %828 = vmatpush1.bf16.msra.mxu0 %v807_v15  ;;  %669 = vmatprep.mubr.f32.mxu0 %v1035_v0 }
  0x6b   : > { %352 = vmatmul.mubr.f32.vlgmr.msra.gmra.mrb[0].mxu1 %v255_v17 }
  0x6c   : > { %816 = vmatpush1.bf16.msra.mxu1 %v815_v39  ;;  %430 = vmatprep.mubr.f32.mxu1 %v1035_v0 }
  0x6f   : > { %671 = vmatmul.mubr.f32.vlgmr.msra.gmra.mrb[0].mxu0 %v255_v17 }
  0x73   : > { %433 = vmatmul.mubr.f32.vlgmr.msra.gmra.mrb[0].mxu1 %v256_v21 }
 0x142   : > { %v672_v40 = vpop.f32.mrb[0].mxu0 }
 0x143   : > { %v674_v41 = vpop.f32.mrb[1].mxu0 }
 0x146   : > { %v434_v42 = vpop.f32.mrb[0].mxu1 }
 0x147   : > { %v829_v43 = vadd.f32 %v672_v40, %v434_v42  ;;  %v436_v44 = vpop.f32.mrb[1].mxu1 }
 0x148   : > { %v830_v45 = vadd.f32 %v674_v41, %v436_v44 }
 0x14a   : > { %v679_v46 = vcombine.low %v829_v43, %v830_v45 }
 0x14c   : > { %797 = vst.sshfl [vmem:[%s174_s28] sm:$0x33 pattern:$0x76325410] %v679_v46 }
 0x14d   : > { %971 = shalt.err (!%p968_p13)
}
 0x14e   : > { %s972_s19 = scalar_lea.hbm %s1205_s8, 64  ;;  %s976_s4 = scalar_lea.hbm %s1251_s2, 128 }
 0x14f   : > { %p973_p7 = scmp.ne.s32.totalorder %s1205_s8, %s972_s19  ;;  %p977_p1 = scmp.lt.u32.totalorder %s1205_s8, %s1251_s2 }
 0x150   : > { %p978_p8 = scmp.lt.u32.totalorder %s976_s4, %s972_s19  ;;  %p980_p11 = scmp.lt.u32.totalorder %s972_s19, %s1205_s8 }
 0x151   : > { %p974_p3 = pnand %p973_p7, %p1270_p10 }
 0x152   : > { %p979_p9 = por %p978_p8, %p977_p1 }
 0x153   : > { %p975_p12 = pneg %p974_p3 }
 0x154   : > { %p981_p2 = por %p980_p11, %p979_p9 }
 0x156   : > { %p982_p4 = pnand %p981_p2, %p975_p12 }
 0x158   : > { %985 = shalt.err (!%p982_p4)
}
 0x159   : > { %845 = dma.vmem_to_hbm [thread:$0]  (%p1270_p10), %s1207_s30, 64, %s1205_s8, %s690_s14  }
 0x15a PF: > { %s716_s29 = sand.u32 1, %s1016_s9   ;;  %p1271_p5 = scmp.ne.s32.totalorder %s1260_s22, 0 }
 0x15b   : > { %p1272_p0 = scmp.ge.s32.totalorder %s1028_s12, 2  ;;  %s717_s7 = scalar_lea.sflag [#allocation4], %s716_s29 }
 0x15d   : > { %p856_p6 = pnand %p1272_p0, %p1271_p5 }
 0x15f   : > { %1011 = dma.done.wait (!%p856_p6), %s717_s7, 64  }
 0x160   : > { %1013 = vsyncadd (!%p856_p6), %s717_s7, 4294967232  ;;  %p16_p13 = scmp.ge.s32.totalorder %s1077_s15, 4   ;;  %s1273_s9 = smov %s1020_s10 }
 0x161   : > { %s1274_s10 = smov %s1024_s11  ;;  %s1275_s11 = smov %s1089_s18 }
 0x162   : > { %s1276_s12 = smov %s1077_s15  ;;  %18 = sbr.rel (!%p16_p13) target bundleno = 6 (0x6), region = 78 }
 0x169   :  { %722 = vsyncpa [#allocation3], 1 }
 0x16a   :  { %724 = vsyncpa [#allocation3 + $0x1], 1 }
 0x16b   :  { %725 = vsyncpa [#allocation6], 1 }
 0x16c   :  { %727 = vsyncpa [#allocation6 + $0x1], 1 }
 0x16d   :  { %728 = vsyncpa [#allocation4], 1 }
 0x16e   :  { %730 = vsyncpa [#allocation4 + $0x1], 1 }

</bundles_post_ra>
